<compile_context>
chip_gen: v7x
topology: tpu7x:2x2x1
jax: 0.10.0
libtpu: 0.0.40
codegen_flags: <defaults>
</compile_context>

<pallas_src>
import functools

import jax
import jax.numpy as jnp
from jax.experimental import pallas as pl
from jax.experimental.pallas import tpu as pltpu


def _round_up(n, m):
    return (n + m - 1) // m * m


def _linear_interp_1d(pe, out_len):
    """F.interpolate(pe, size=out_len, mode='linear', align_corners=False).

    pe: (1, D, L_in) -> (1, D, out_len). Plain-JAX glue (tiny, not the hot path).
    """
    _, _, l_in = pe.shape
    if l_in == out_len:
        return pe
    scale = l_in / out_len
    i = jnp.arange(out_len, dtype=jnp.float32)
    src = jnp.maximum((i + 0.5) * scale - 0.5, 0.0)
    idx0 = jnp.floor(src).astype(jnp.int32)
    idx1 = jnp.minimum(idx0 + 1, l_in - 1)
    lam = (src - idx0.astype(jnp.float32)).astype(pe.dtype)
    return pe[:, :, idx0] * (1.0 - lam) + pe[:, :, idx1] * lam


def _adapter_kernel(xp_ref, w_ref, pe_ref, o_ref):
    # xp_ref: (TB*NW_pad, K_pad) bf16   -- TB batch elements' patches
    # w_ref : (K_pad, D_pad)     bf16   -- projection weight (resident)
    # pe_ref: (NW_pad, D_pad)    f32    -- pos_emb + conv bias (resident)
    # o_ref : (TB*NW_pad, D_pad) f32
    rows, _ = xp_ref.shape
    nw, d = pe_ref.shape
    acc = jnp.dot(xp_ref[...], w_ref[...], preferred_element_type=jnp.float32)
    # Split the row dim into (TB, NW_pad) to broadcast-add the per-patch
    # pos-emb. nw is a multiple of 8, so these f32 reshapes are layout no-ops.
    acc = acc.reshape(rows // nw, nw, d) + pe_ref[...][None, :, :]
    o_ref[...] = acc.reshape(rows, d).astype(o_ref.dtype)


@functools.partial(jax.jit, static_argnames=("patch_size",))
def patched_input_adapter_forward(x, conv_weight, conv_bias, pos_emb, *, patch_size):
    """x: (B, C, W); conv_weight: (D, C, P); conv_bias: (D,); pos_emb: (1, D, L)."""
    B, C, W = x.shape
    P = patch_size
    assert W % P == 0, "W must be divisible by patch size"
    N_W = W // P
    D = conv_weight.shape[0]
    CP = C * P

    # --- glue: patch extraction + weight reshape (pure layout work) ---
    # (B, C, W) -> (B, C, N_W, P) -> (B, N_W, C, P) -> (B, N_W, C*P)
    # TODO(synk): if a profile shows this transpose matters at real shapes,
    # fuse patch extraction into the kernel instead of materializing x_patch.
    x_patch = x.reshape(B, C, N_W, P).transpose(0, 2, 1, 3).reshape(B, N_W, CP)
    w_mat = conv_weight.reshape(D, CP).T                       # (C*P, D)

    pe = _linear_interp_1d(pos_emb, N_W)                       # (1, D, N_W)
    pe = jnp.transpose(pe[0], (1, 0))                          # (N_W, D)
    # Fold the conv bias into the positional embedding (one fewer input stream,
    # one fewer VPU add per element).
    pe_plus_bias = (pe + conv_bias[None, :]).astype(jnp.float32)

    # --- padding: lane/sublane-dense tiles ---
    K_pad = _round_up(CP, 128)
    D_pad = _round_up(D, 128)
    NW_pad = _round_up(N_W, 8)

    # TB = batch elements per grid step; target ~512 output rows per step,
    # capped so the per-step blocks stay comfortably inside VMEM.
    TB = max(1, 512 // NW_pad)
    TB = min(TB, B)
    while TB > 1 and TB * NW_pad * (K_pad * 2 + D_pad * 4) > 8 * 1024 * 1024:
        TB //= 2
    B_pad = _round_up(B, TB)
    rows_per_step = TB * NW_pad
    M_pad = B_pad * NW_pad

    x_bf = jnp.pad(
        x_patch.astype(jnp.bfloat16),
        ((0, B_pad - B), (0, NW_pad - N_W), (0, K_pad - CP)),
    ).reshape(M_pad, K_pad)                                    # (B_pad*NW_pad, K_pad)
    w_bf = jnp.pad(
        w_mat.astype(jnp.bfloat16),
        ((0, K_pad - CP), (0, D_pad - D)),
    )                                                          # (K_pad, D_pad)
    pe_pad = jnp.pad(pe_plus_bias, ((0, NW_pad - N_W), (0, D_pad - D)))  # (NW_pad, D_pad)

    cost = pl.CostEstimate(
        flops=2 * M_pad * K_pad * D_pad,
        transcendentals=0,
        bytes_accessed=(M_pad * K_pad * 2          # x patches (bf16)
                        + K_pad * D_pad * 2        # weight (bf16, resident)
                        + NW_pad * D_pad * 4       # pos_emb+bias (f32, resident)
                        + M_pad * D_pad * 4),      # output (f32)
    )

    # --- Pallas hot path: batch-tiled matmul + (pos_emb + bias) add ---
    out = pl.pallas_call(
        _adapter_kernel,
        out_shape=jax.ShapeDtypeStruct((M_pad, D_pad), jnp.float32),
        grid=(B_pad // TB,),
        in_specs=[
            pl.BlockSpec((rows_per_step, K_pad), lambda b: (b, 0)),  # x patches
            pl.BlockSpec((K_pad, D_pad), lambda b: (0, 0)),          # proj weight
            pl.BlockSpec((NW_pad, D_pad), lambda b: (0, 0)),         # pos emb + bias
        ],
        out_specs=pl.BlockSpec((rows_per_step, D_pad), lambda b: (b, 0)),
        compiler_params=pltpu.CompilerParams(dimension_semantics=("parallel",)),
        cost_estimate=cost,
    )(x_bf, w_bf, pe_pad)

    out = out.reshape(B_pad, NW_pad, D_pad)[:B, :N_W, :D]
    return out.astype(x.dtype)


if __name__ == "__main__":
    # Small shapes consistent with the module:
    #   num_channels=4, stride_level=1, patch_size_full=4, dim_tokens=32, image_size=16
    B, C, W = 2, 4, 16
    P = 4
    D = 32
    image_size = 16
    w_posemb = image_size // P

    key = jax.random.PRNGKey(0)
    kx, kw, kb, kp = jax.random.split(key, 4)

    x = jax.random.normal(kx, (B, C, W), dtype=jnp.float32)
    # Conv1d(C -> D, kernel_size=P, stride=P) parameters, deterministic init.
    conv_weight = 0.02 * jax.random.normal(kw, (D, C, P), dtype=jnp.float32)
    conv_bias = 0.02 * jax.random.normal(kb, (D,), dtype=jnp.float32)
    # pos_emb ~ trunc_normal(std=0.02), shape (1, dim_tokens, w_posemb)
    pos_emb = 0.02 * jax.random.truncated_normal(
        kp, -2.0, 2.0, (1, D, w_posemb), dtype=jnp.float32
    )

    out = patched_input_adapter_forward(
        x, conv_weight, conv_bias, pos_emb, patch_size=P
    )
    out = jax.block_until_ready(out)

    # References (same math as Conv1d stride=kernel_size + pos-emb add).
    N_W = W // P
    CP = C * P
    x_patch_ref = x.reshape(B, C, N_W, P).transpose(0, 2, 1, 3).reshape(B, N_W, CP)
    w_mat_ref = conv_weight.reshape(D, CP).T
    pe_ref = jnp.transpose(_linear_interp_1d(pos_emb, N_W)[0], (1, 0))

    # (a) bf16-operand reference (same cast as the kernel) — tight tolerance.
    ref_bf16 = (
        jnp.einsum(
            "bnk,kd->bnd",
            x_patch_ref.astype(jnp.bfloat16),
            w_mat_ref.astype(jnp.bfloat16),
            preferred_element_type=jnp.float32,
        )
        + conv_bias[None, None, :]
        + pe_ref[None, :, :]
    )
    # (b) full f32 reference — loose tolerance (bf16 operand rounding).
    ref_f32 = (
        jnp.einsum("bnk,kd->bnd", x_patch_ref, w_mat_ref)
        + conv_bias[None, None, :]
        + pe_ref[None, :, :]
    )

    assert out.shape == (B, N_W, D), out.shape
    assert jnp.allclose(out, ref_bf16, atol=1e-4, rtol=1e-4), "mismatch vs bf16 reference"
    assert jnp.allclose(out, ref_f32, atol=2e-2, rtol=2e-2), "mismatch vs f32 reference"
    print("KERNEL_OK")
</pallas_src>

<mosaic_0001>
module attributes {stable_mosaic.version = 11 : i64} {
  func.func @_adapter_kernel(%arg0: i32, %arg1: memref<16x128xbf16, #tpu.memory_space<vmem>>, %arg2: memref<128x128xbf16, #tpu.memory_space<vmem>>, %arg3: memref<8x128xf32, #tpu.memory_space<vmem>>, %arg4: memref<16x128xf32, #tpu.memory_space<vmem>>) attributes {dimension_semantics = [#tpu.dimension_semantics<parallel>], iteration_bounds = array<i64: 1>, scalar_prefetch = 0 : i64, scratch_operands = 0 : i64, tpu.core_type = #tpu.core_type<tc>, window_params = [{transform_indices = @transform_0, window_bounds = array<i64: 16, 128>}, {pipeline_mode = #tpu.pipeline_mode<synchronous>, transform_indices = @transform_1, window_bounds = array<i64: 128, 128>}, {pipeline_mode = #tpu.pipeline_mode<synchronous>, transform_indices = @transform_2, window_bounds = array<i64: 8, 128>}, {transform_indices = @transform_3, window_bounds = array<i64: 16, 128>}]} {
    %c0 = arith.constant 0 : index
    %c0_0 = arith.constant 0 : index
    %0 = vector.load %arg1[%c0, %c0_0] : memref<16x128xbf16, #tpu.memory_space<vmem>>, vector<16x128xbf16>
    %c0_1 = arith.constant 0 : index
    %c0_2 = arith.constant 0 : index
    %1 = vector.load %arg2[%c0_1, %c0_2] : memref<128x128xbf16, #tpu.memory_space<vmem>>, vector<128x128xbf16>
    %cst = arith.constant dense<0.000000e+00> : vector<16x128xf32>
    %2 = tpu.matmul %0, %1, %cst {dimension_numbers = #tpu.dot_dimension_numbers<[1], [0], [0], [1], [0, 0, 1, 1], [], []>} : vector<16x128xbf16>, vector<128x128xbf16>, vector<16x128xf32> -> vector<16x128xf32>
    %3 = vector.shape_cast %2 : vector<16x128xf32> to vector<2x8x128xf32>
    %c0_3 = arith.constant 0 : index
    %c0_4 = arith.constant 0 : index
    %4 = vector.load %arg3[%c0_3, %c0_4] : memref<8x128xf32, #tpu.memory_space<vmem>>, vector<8x128xf32>
    %5 = vector.shape_cast %4 : vector<8x128xf32> to vector<1x8x128xf32>
    %6 = vector.broadcast %5 : vector<1x8x128xf32> to vector<2x8x128xf32>
    %7 = arith.addf %3, %6 : vector<2x8x128xf32>
    %8 = vector.shape_cast %7 : vector<2x8x128xf32> to vector<16x128xf32>
    %c0_5 = arith.constant 0 : index
    %c0_6 = arith.constant 0 : index
    %9 = vector.load %arg4[%c0_5, %c0_6] : memref<16x128xf32, #tpu.memory_space<vmem>>, vector<16x128xf32>
    tpu.vector_store %arg4[%c0_5, %c0_6], %8 {strides = array<i32>} : memref<16x128xf32, #tpu.memory_space<vmem>>, vector<16x128xf32>,
    return
  }
  func.func @transform_0(%arg0: i32) -> (i32, i32) {
    %c0_i32 = arith.constant 0 : i32
    %c0_i32_0 = arith.constant 0 : i32
    return %arg0, %c0_i32 : i32, i32
  }
  func.func @transform_1(%arg0: i32) -> (i32, i32) {
    %c0_i32 = arith.constant 0 : i32
    %c0_i32_0 = arith.constant 0 : i32
    %c0_i32_1 = arith.constant 0 : i32
    return %c0_i32, %c0_i32_0 : i32, i32
  }
  func.func @transform_2(%arg0: i32) -> (i32, i32) {
    %c0_i32 = arith.constant 0 : i32
    %c0_i32_0 = arith.constant 0 : i32
    %c0_i32_1 = arith.constant 0 : i32
    return %c0_i32, %c0_i32_0 : i32, i32
  }
  func.func @transform_3(%arg0: i32) -> (i32, i32) {
    %c0_i32 = arith.constant 0 : i32
    %c0_i32_0 = arith.constant 0 : i32
    return %arg0, %c0_i32 : i32, i32
  }
}

</mosaic_0001>

<bundles_post_ra>
// kernel: patched_input_adapter_forward.1
= control target key start
LH: loop header
LB: loop body
LE: loop exit
PB: predicated region body
PF: predicated region fallthrough
CT: control target
= control target key end

     0   :  { %v186_v0 = vmov 0.0   ;;  %vm187_vm0 = vmmov 0   ;;  %s244_s1 = inlined_call_operand.vmem [shape: bf16[128,128], index: 1, kind: input, shape index: {}]   ;;  %s245_s0 = inlined_call_operand.vmem [shape: bf16[16,128], index: 0, kind: input, shape index: {}]   ;;  %s246_s2 = inlined_call_operand.vmem [shape: f32[8,128], index: 2, kind: input, shape index: {}]   ;;  %s247_s3 = inlined_call_operand.vmem [shape: f32[16,128], index: 3, kind: output, shape index: {}]  }
   0x1   :  { %155 = vmatprep.subr.bf16.mxu0 %v186_v0  ;;  %v177_v1 = vld [vmem:[%s244_s1] sm:$0xff]   ;;  %171 = vmatprep.mubr.msk.bf16.mxu0 %vm187_vm0, %v186_v0  ;;  %v178_v2 = vld [vmem:[%s244_s1 + $0x8] sm:$0xff]   ;;  %v179_v3 = vld [vmem:[%s244_s1 + $0x10] sm:$0xff]  }
   0x2   :  { %156 = vmatpush3.bf16.msra.mxu0 %v177_v1  ;;  %v180_v4 = vld [vmem:[%s244_s1 + $0x18] sm:$0xff]   ;;  %v181_v5 = vld [vmem:[%s244_s1 + $0x20] sm:$0xff]   ;;  %v182_v6 = vld [vmem:[%s244_s1 + $0x28] sm:$0xff]  }
   0x3   :  { %157 = vmatprep.subr.bf16.mxu0 %v186_v0  ;;  %v183_v7 = vld [vmem:[%s244_s1 + $0x30] sm:$0xff]   ;;  %v184_v8 = vld [vmem:[%s244_s1 + $0x38] sm:$0xff]   ;;  %v185_v9 = vld [vmem:[%s245_s0] sm:$0xff]  }
   0x4   :  { %v128_v10 = vld [vmem:[%s246_s2] sm:$0xff] }
   0x6   :  { %158 = vmatpush3.bf16.msra.mxu0 %v178_v2 }
   0x7   :  { %159 = vmatprep.subr.bf16.mxu0 %v186_v0 }
   0xa   :  { %160 = vmatpush3.bf16.msra.mxu0 %v179_v3 }
   0xb   :  { %161 = vmatprep.subr.bf16.mxu0 %v186_v0 }
   0xe   :  { %162 = vmatpush3.bf16.msra.mxu0 %v180_v4 }
   0xf   :  { %163 = vmatprep.subr.bf16.mxu0 %v186_v0 }
  0x12   :  { %164 = vmatpush3.bf16.msra.mxu0 %v181_v5 }
  0x13   :  { %165 = vmatprep.subr.bf16.mxu0 %v186_v0 }
  0x16   :  { %166 = vmatpush3.bf16.msra.mxu0 %v182_v6 }
  0x17   :  { %167 = vmatprep.subr.bf16.mxu0 %v186_v0 }
  0x1a   :  { %168 = vmatpush3.bf16.msra.mxu0 %v183_v7 }
  0x1b   :  { %169 = vmatprep.subr.bf16.mxu0 %v186_v0 }
  0x1e   :  { %170 = vmatpush3.bf16.msra.mxu0 %v184_v8 }
  0x21   :  { %172 = vmatmul.mubr.bf16.vlgmr.msra.gmra.mrb[0].mxu0 %v185_v9 }
  0xf4   :  { %v121_v11 = vpop.f32.mrb[0].mxu0 }
  0xf5   :  { %v129_v12 = vadd.f32 %v128_v10, %v121_v11  ;;  %v173_v13 = vpop.f32.mrb[1].mxu0 }
  0xf6   :  { %v124_v14 = vpop.f32.mrb[2].mxu0 }
  0xf7   :  { %131 = vst [vmem:[%s247_s3] sm:$0xff] %v129_v12  ;;  %v130_v15 = vadd.f32 %v128_v10, %v124_v14  ;;  %v174_v16 = vpop.f32.mrb[3].mxu0 }
  0xf9   :  { %132 = vst [vmem:[%s247_s3 + $0x8] sm:$0xff] %v130_v15 }

</bundles_post_ra>
